<compile_context>
chip_gen: v5e
topology: v5e:2x2
jax: 0.10.0
libtpu: 0.0.40
codegen_flags: <defaults>
</compile_context>

<pallas_src>
import functools

import jax
import jax.numpy as jnp
from jax.experimental import pallas as pl
from jax.experimental.pallas import tpu as pltpu


def _round_up(v, m):
    return ((v + m - 1) // m) * m


def _vmem_bytes(tile_m, n_pad, c_pad):
    """Rough VMEM footprint of the fused kernel for a given row tile size."""
    adj_tiles = 2 * tile_m * n_pad * 2          # double-buffered bf16 adj tiles
    x_full = 2 * n_pad * c_pad * 4              # padded input features
    act = 2 * n_pad * c_pad * 4                 # ping-pong activation scratch
    weights = 2 * (c_pad * c_pad + c_pad) * 4   # double-buffered per-layer W / b
    out_tiles = 2 * tile_m * c_pad * 4          # double-buffered output tiles
    return adj_tiles + x_full + act + weights + out_tiles


def _choose_tile_m(n_pad, c_pad, budget_bytes):
    for tm in (512, 256, 128):
        if n_pad % tm == 0 and _vmem_bytes(tm, n_pad, c_pad) <= budget_bytes:
            return tm
    return 128  # n_pad is always a multiple of 128


def _gin_fused_kernel(eps_ref, adj_ref, x_ref, w_ref, b_ref, o_ref, act_ref,
                      *, n_layers, tile_m):
    """Grid = (layer, row_tile).  One step: one row tile of one GINConv layer."""
    l = pl.program_id(0)   # layer index (outer, sequential)
    i = pl.program_id(1)   # row-tile index (inner)

    # Stage the padded input features into ping-pong buffer 0 exactly once.
    @pl.when(jnp.logical_and(l == 0, i == 0))
    def _():
        act_ref[0, :, :] = x_ref[...]

    src = l % 2          # activation buffer holding this layer's input
    dst = (l + 1) % 2    # buffer receiving this layer's output

    row0 = pl.multiple_of(i * tile_m, tile_m)
    src_full = act_ref[src]                            # (N_pad, C_pad) layer input
    src_tile = act_ref[src, pl.ds(row0, tile_m), :]    # this tile's own rows

    # GIN aggregation on the MXU: adj_tile @ x, plus the (1+eps) self term.
    # adj is 0/1 stored as bf16 -> the f32 upcast is exact.
    agg = jnp.dot(adj_ref[...].astype(jnp.float32), src_full,
                  preferred_element_type=jnp.float32)
    h = agg + (1.0 + eps_ref[l]) * src_tile

    # The GINConv's 1-layer MLP (nn.Linear) on the MXU; W/b streamed per layer.
    out = jnp.dot(h, w_ref[0], preferred_element_type=jnp.float32) + b_ref[0]

    # ReLU + scratch write only feed the NEXT layer -> skip on the last one.
    @pl.when(l < n_layers - 1)
    def _():
        act_ref[dst, pl.ds(row0, tile_m), :] = jnp.maximum(out, 0.0)

    # Only the final layer's result goes to HBM.
    @pl.when(l == n_layers - 1)
    def _():
        o_ref[...] = out.astype(o_ref.dtype)


def gin_forward(x, adj, params):
    """Run the whole GIN forward pass as one fused Pallas call.

    params: list of (w [d_out, d_in], b [d_out], eps scalar) per GINConv layer
            (PyTorch nn.Linear layout).
    """
    n, c_in = x.shape
    n_layers = len(params)
    dims = [c_in] + [w.shape[0] for (w, _, _) in params]
    c_out = dims[-1]

    # Lane-dense padding: channels and rows up to multiples of 128.  Zero
    # padding is exact (padded columns stay zero through linear/ReLU/aggregate,
    # padded rows have zero adjacency so they never contaminate real nodes).
    c_pad = _round_up(max(dims), 128)
    n_pad = _round_up(n, 128)

    budget = 24 * 1024 * 1024
    tile_m = _choose_tile_m(n_pad, c_pad, budget)
    n_tiles = n_pad // tile_m
    # TODO(synk): graphs whose (N_pad, C_pad) activations exceed VMEM would need
    # an HBM activation-spill path; this fused design keeps activations resident.

    x_p = jnp.zeros((n_pad, c_pad), jnp.float32).at[:n, :c_in].set(x.astype(jnp.float32))
    adj_p = jnp.zeros((n_pad, n_pad), jnp.float32).at[:n, :n].set(adj.astype(jnp.float32))
    adj_bf = adj_p.astype(jnp.bfloat16)   # 0/1 entries -> exact in bf16, half the bytes

    w_stack = jnp.zeros((n_layers, c_pad, c_pad), jnp.float32)
    b_stack = jnp.zeros((n_layers, 1, c_pad), jnp.float32)
    eps_arr = jnp.zeros((n_layers,), jnp.float32)
    for l, (w, b, eps) in enumerate(params):
        d_out, d_in = w.shape
        w_stack = w_stack.at[l, :d_in, :d_out].set(w.T.astype(jnp.float32))
        b_stack = b_stack.at[l, 0, :d_out].set(b.astype(jnp.float32))
        eps_arr = eps_arr.at[l].set(jnp.asarray(eps, jnp.float32))

    est = _vmem_bytes(tile_m, n_pad, c_pad)
    vmem_limit = int(min(max(2 * est, 32 * 1024 * 1024), 48 * 1024 * 1024))

    flops = n_layers * (2 * n_pad * n_pad * c_pad + 2 * n_pad * c_pad * c_pad)
    bytes_accessed = (adj_bf.size * 2 * (1 if n_tiles == 1 else n_layers)
                      + x_p.size * 4 + w_stack.size * 4 + b_stack.size * 4
                      + n_pad * c_pad * 4)

    kernel = functools.partial(_gin_fused_kernel, n_layers=n_layers, tile_m=tile_m)

    out_pad = pl.pallas_call(
        kernel,
        out_shape=jax.ShapeDtypeStruct((n_pad, c_pad), jnp.float32),
        grid_spec=pltpu.PrefetchScalarGridSpec(
            num_scalar_prefetch=0,
            grid=(n_layers, n_tiles),
            in_specs=[
                pl.BlockSpec(memory_space=pltpu.MemorySpace.SMEM),         # eps (L,)
                pl.BlockSpec((tile_m, n_pad), lambda l, i: (i, 0)),        # adj row tile (bf16)
                pl.BlockSpec((n_pad, c_pad), lambda l, i: (0, 0)),         # x, resident
                pl.BlockSpec((1, c_pad, c_pad), lambda l, i: (l, 0, 0)),   # W, per layer
                pl.BlockSpec((1, 1, c_pad), lambda l, i: (l, 0, 0)),       # b, per layer
            ],
            out_specs=pl.BlockSpec((tile_m, c_pad), lambda l, i: (i, 0)),
            scratch_shapes=[pltpu.VMEM((2, n_pad, c_pad), jnp.float32)],
        ),
        compiler_params=pltpu.CompilerParams(
            # Row tiles of layer l feed ALL row tiles of layer l+1 through the
            # shared VMEM activation scratch, so both axes must stay sequential.
            dimension_semantics=("arbitrary", "arbitrary"),
            vmem_limit_bytes=vmem_limit,
        ),
        cost_estimate=pl.CostEstimate(flops=int(flops), transcendentals=0,
                                      bytes_accessed=int(bytes_accessed)),
    )(eps_arr, adj_bf, x_p, w_stack, b_stack)

    return out_pad[:n, :c_out]


def init_gin_params(key, in_channels, hidden_channels, out_channels, n_layers=3):
    """Deterministic parameter init mirroring the PyTorch module's shapes."""
    dims = [in_channels] + [hidden_channels] * (n_layers - 1) + [out_channels]
    params = []
    for i in range(n_layers):
        d_in, d_out = dims[i], dims[i + 1]
        key, kw, kb = jax.random.split(key, 3)
        bound = 1.0 / float(d_in) ** 0.5
        w = jax.random.uniform(kw, (d_out, d_in), jnp.float32, -bound, bound)
        b = jax.random.uniform(kb, (d_out,), jnp.float32, -bound, bound)
        eps = jnp.zeros((), jnp.float32)   # GINConv train_eps init value
        params.append((w, b, eps))
    return params


if __name__ == "__main__":
    key = jax.random.PRNGKey(0)
    N, IN_C, HID_C, OUT_C = 128, 64, 64, 32

    k_x, k_adj, k_p = jax.random.split(key, 3)
    x = jax.random.normal(k_x, (N, IN_C), jnp.float32)
    # Random symmetric binary adjacency with no self-loops.
    a = (jax.random.uniform(k_adj, (N, N)) < 0.05).astype(jnp.float32)
    adj = jnp.maximum(a, a.T) * (1.0 - jnp.eye(N, dtype=jnp.float32))

    params = init_gin_params(k_p, IN_C, HID_C, OUT_C, n_layers=3)

    out = gin_forward(x, adj, params)
    jax.block_until_ready(out)

    # Pure-JAX reference of the same math (f32 end to end).
    ref = x
    for idx, (w, b, eps) in enumerate(params):
        h = adj @ ref + (1.0 + eps) * ref
        ref = h @ w.T + b
        if idx < len(params) - 1:
            ref = jnp.maximum(ref, 0.0)

    assert out.shape == (N, OUT_C)
    max_err = float(jnp.max(jnp.abs(out - ref)))
    assert jnp.allclose(out, ref, atol=1e-3, rtol=1e-3), f"max abs err {max_err}"

    print("KERNEL_OK")
</pallas_src>

<mosaic_0001>
module attributes {stable_mosaic.version = 11 : i64} {
  func.func @_gin_fused_kernel(%arg0: i32, %arg1: i32, %arg2: memref<3xf32, #tpu.memory_space<smem>>, %arg3: memref<128x128xbf16, #tpu.memory_space<vmem>>, %arg4: memref<128x128xf32, #tpu.memory_space<vmem>>, %arg5: memref<1x128x128xf32, #tpu.memory_space<vmem>>, %arg6: memref<1x1x128xf32, #tpu.memory_space<vmem>>, %arg7: memref<128x128xf32, #tpu.memory_space<vmem>>, %arg8: memref<2x128x128xf32, #tpu.memory_space<vmem>>) attributes {dimension_semantics = [#tpu.dimension_semantics<arbitrary>, #tpu.dimension_semantics<arbitrary>], iteration_bounds = array<i64: 3, 1>, scalar_prefetch = 0 : i64, scratch_operands = 1 : i64, tpu.core_type = #tpu.core_type<tc>, window_params = [{transform_indices = @transform_0, window_bounds = array<i64: 3>}, {transform_indices = @transform_1, window_bounds = array<i64: 128, 128>}, {pipeline_mode = #tpu.pipeline_mode<synchronous>, transform_indices = @transform_2, window_bounds = array<i64: 128, 128>}, {transform_indices = @transform_3, window_bounds = array<i64: 1, 128, 128>}, {transform_indices = @transform_4, window_bounds = array<i64: 1, 1, 128>}, {transform_indices = @transform_5, window_bounds = array<i64: 128, 128>}]} {
    %c0_i32 = arith.constant 0 : i32
    %0 = arith.cmpi eq, %arg0, %c0_i32 : i32
    %c0_i32_0 = arith.constant 0 : i32
    %1 = arith.cmpi eq, %arg1, %c0_i32_0 : i32
    %2 = arith.andi %0, %1 : i1
    %3 = arith.extui %2 : i1 to i32
    %c0_i32_1 = arith.constant 0 : i32
    %4 = arith.cmpi ne, %3, %c0_i32_1 : i32
    scf.if %4 {
      %c0_29 = arith.constant 0 : index
      %c0_30 = arith.constant 0 : index
      %57 = vector.load %arg4[%c0_29, %c0_30] : memref<128x128xf32, #tpu.memory_space<vmem>>, vector<128x128xf32>
      %c0_31 = arith.constant 0 : index
      %c0_32 = arith.constant 0 : index
      %c0_33 = arith.constant 0 : index
      %58 = vector.load %arg8[%c0_31, %c0_32, %c0_33] : memref<2x128x128xf32, #tpu.memory_space<vmem>>, vector<1x128x128xf32>
      %59 = vector.shape_cast %58 : vector<1x128x128xf32> to vector<128x128xf32>
      %60 = vector.shape_cast %57 : vector<128x128xf32> to vector<1x128x128xf32>
      tpu.vector_store %arg8[%c0_31, %c0_32, %c0_33], %60 {strides = array<i32>} : memref<2x128x128xf32, #tpu.memory_space<vmem>>, vector<1x128x128xf32>,
    } else {
    }
    %c2_i32 = arith.constant 2 : i32
    %c0_i32_2 = arith.constant 0 : i32
    %5 = arith.cmpi eq, %c2_i32, %c0_i32_2 : i32
    %c1_i32 = arith.constant 1 : i32
    %6 = arith.select %5, %c1_i32, %c2_i32 : i32
    %7 = arith.remsi %arg0, %6 : i32
    %c0_i32_3 = arith.constant 0 : i32
    %8 = arith.cmpi ne, %7, %c0_i32_3 : i32
    %c0_i32_4 = arith.constant 0 : i32
    %9 = arith.cmpi slt, %7, %c0_i32_4 : i32
    %c0_i32_5 = arith.constant 0 : i32
    %10 = arith.cmpi slt, %6, %c0_i32_5 : i32
    %11 = arith.xori %9, %10 : i1
    %12 = arith.andi %11, %8 : i1
    %13 = arith.addi %7, %6 : i32
    %14 = arith.select %12, %13, %7 : i32
    %c1_i32_6 = arith.constant 1 : i32
    %15 = arith.addi %arg0, %c1_i32_6 : i32
    %c2_i32_7 = arith.constant 2 : i32
    %c0_i32_8 = arith.constant 0 : i32
    %16 = arith.cmpi eq, %c2_i32_7, %c0_i32_8 : i32
    %c1_i32_9 = arith.constant 1 : i32
    %17 = arith.select %16, %c1_i32_9, %c2_i32_7 : i32
    %18 = arith.remsi %15, %17 : i32
    %c0_i32_10 = arith.constant 0 : i32
    %19 = arith.cmpi ne, %18, %c0_i32_10 : i32
    %c0_i32_11 = arith.constant 0 : i32
    %20 = arith.cmpi slt, %18, %c0_i32_11 : i32
    %c0_i32_12 = arith.constant 0 : i32
    %21 = arith.cmpi slt, %17, %c0_i32_12 : i32
    %22 = arith.xori %20, %21 : i1
    %23 = arith.andi %22, %19 : i1
    %24 = arith.addi %18, %17 : i32
    %25 = arith.select %23, %24, %18 : i32
    %c128_i32 = arith.constant 128 : i32
    %26 = arith.muli %arg1, %c128_i32 : i32
    %27 = tpu.assume_multiple %26, 128 : i32
    %28 = arith.index_cast %14 : i32 to index
    %c0 = arith.constant 0 : index
    %c0_13 = arith.constant 0 : index
    %29 = vector.load %arg8[%28, %c0, %c0_13] : memref<2x128x128xf32, #tpu.memory_space<vmem>>, vector<1x128x128xf32>
    %30 = vector.shape_cast %29 : vector<1x128x128xf32> to vector<128x128xf32>
    %31 = arith.index_cast %14 : i32 to index
    %32 = arith.index_cast %27 : i32 to index
    %c0_14 = arith.constant 0 : index
    %33 = vector.load %arg8[%31, %32, %c0_14] : memref<2x128x128xf32, #tpu.memory_space<vmem>>, vector<1x128x128xf32>
    %34 = vector.shape_cast %33 : vector<1x128x128xf32> to vector<128x128xf32>
    %c0_15 = arith.constant 0 : index
    %c0_16 = arith.constant 0 : index
    %35 = vector.load %arg3[%c0_15, %c0_16] : memref<128x128xbf16, #tpu.memory_space<vmem>>, vector<128x128xbf16>
    %36 = arith.extf %35 : vector<128x128xbf16> to vector<128x128xf32>
    %cst = arith.constant dense<0.000000e+00> : vector<128x128xf32>
    %37 = tpu.matmul %36, %30, %cst {dimension_numbers = #tpu.dot_dimension_numbers<[1], [0], [0], [1], [0, 0, 1, 1], [], []>} : vector<128x128xf32>, vector<128x128xf32>, vector<128x128xf32> -> vector<128x128xf32>
    %38 = arith.index_cast %arg0 : i32 to index
    %39 = memref.load %arg2[%38] : memref<3xf32, #tpu.memory_space<smem>>
    %cst_17 = arith.constant 1.000000e+00 : f32
    %40 = arith.addf %cst_17, %39 : f32
    %41 = vector.broadcast %40 : f32 to vector<128x128xf32>
    %42 = arith.mulf %41, %34 : vector<128x128xf32>
    %43 = arith.addf %37, %42 : vector<128x128xf32>
    %c0_18 = arith.constant 0 : index
    %c0_19 = arith.constant 0 : index
    %c0_20 = arith.constant 0 : index
    %44 = vector.load %arg5[%c0_18, %c0_19, %c0_20] : memref<1x128x128xf32, #tpu.memory_space<vmem>>, vector<1x128x128xf32>
    %45 = vector.shape_cast %44 : vector<1x128x128xf32> to vector<128x128xf32>
    %cst_21 = arith.constant dense<0.000000e+00> : vector<128x128xf32>
    %46 = tpu.matmul %43, %45, %cst_21 {dimension_numbers = #tpu.dot_dimension_numbers<[1], [0], [0], [1], [0, 0, 1, 1], [], []>} : vector<128x128xf32>, vector<128x128xf32>, vector<128x128xf32> -> vector<128x128xf32>
    %c0_22 = arith.constant 0 : index
    %c0_23 = arith.constant 0 : index
    %c0_24 = arith.constant 0 : index
    %47 = vector.load %arg6[%c0_22, %c0_23, %c0_24] : memref<1x1x128xf32, #tpu.memory_space<vmem>>, vector<1x1x128xf32>
    %48 = vector.shape_cast %47 : vector<1x1x128xf32> to vector<1x128xf32>
    %49 = vector.broadcast %48 : vector<1x128xf32> to vector<128x128xf32>
    %50 = arith.addf %46, %49 : vector<128x128xf32>
    %c2_i32_25 = arith.constant 2 : i32
    %51 = arith.cmpi slt, %arg0, %c2_i32_25 : i32
    %52 = arith.extui %51 : i1 to i32
    %c0_i32_26 = arith.constant 0 : i32
    %53 = arith.cmpi ne, %52, %c0_i32_26 : i32
    scf.if %53 {
      %cst_29 = arith.constant 0.000000e+00 : f32
      %57 = vector.broadcast %cst_29 : f32 to vector<128x128xf32>
      %58 = arith.maximumf %50, %57 : vector<128x128xf32>
      %59 = arith.index_cast %25 : i32 to index
      %60 = arith.index_cast %27 : i32 to index
      %c0_30 = arith.constant 0 : index
      %61 = vector.load %arg8[%59, %60, %c0_30] : memref<2x128x128xf32, #tpu.memory_space<vmem>>, vector<1x128x128xf32>
      %62 = vector.shape_cast %61 : vector<1x128x128xf32> to vector<128x128xf32>
      %63 = vector.shape_cast %58 : vector<128x128xf32> to vector<1x128x128xf32>
      tpu.vector_store %arg8[%59, %60, %c0_30], %63 {strides = array<i32>} : memref<2x128x128xf32, #tpu.memory_space<vmem>>, vector<1x128x128xf32>,
    } else {
    }
    %c2_i32_27 = arith.constant 2 : i32
    %54 = arith.cmpi eq, %arg0, %c2_i32_27 : i32
    %55 = arith.extui %54 : i1 to i32
    %c0_i32_28 = arith.constant 0 : i32
    %56 = arith.cmpi ne, %55, %c0_i32_28 : i32
    scf.if %56 {
      %c0_29 = arith.constant 0 : index
      %c0_30 = arith.constant 0 : index
      %57 = vector.load %arg7[%c0_29, %c0_30] : memref<128x128xf32, #tpu.memory_space<vmem>>, vector<128x128xf32>
      tpu.vector_store %arg7[%c0_29, %c0_30], %50 {strides = array<i32>} : memref<128x128xf32, #tpu.memory_space<vmem>>, vector<128x128xf32>,
    } else {
    }
    return
  }
  func.func @transform_0(%arg0: i32, %arg1: i32) -> i32 {
    %c0_i32 = arith.constant 0 : i32
    %c0_i32_0 = arith.constant 0 : i32
    return %c0_i32 : i32
  }
  func.func @transform_1(%arg0: i32, %arg1: i32) -> (i32, i32) {
    %c0_i32 = arith.constant 0 : i32
    %c0_i32_0 = arith.constant 0 : i32
    return %arg1, %c0_i32 : i32, i32
  }
  func.func @transform_2(%arg0: i32, %arg1: i32) -> (i32, i32) {
    %c0_i32 = arith.constant 0 : i32
    %c0_i32_0 = arith.constant 0 : i32
    %c0_i32_1 = arith.constant 0 : i32
    return %c0_i32, %c0_i32_0 : i32, i32
  }
  func.func @transform_3(%arg0: i32, %arg1: i32) -> (i32, i32, i32) {
    %c0_i32 = arith.constant 0 : i32
    %c0_i32_0 = arith.constant 0 : i32
    %c0_i32_1 = arith.constant 0 : i32
    return %arg0, %c0_i32, %c0_i32_0 : i32, i32, i32
  }
  func.func @transform_4(%arg0: i32, %arg1: i32) -> (i32, i32, i32) {
    %c0_i32 = arith.constant 0 : i32
    %c0_i32_0 = arith.constant 0 : i32
    %c0_i32_1 = arith.constant 0 : i32
    return %arg0, %c0_i32, %c0_i32_0 : i32, i32, i32
  }
  func.func @transform_5(%arg0: i32, %arg1: i32) -> (i32, i32) {
    %c0_i32 = arith.constant 0 : i32
    %c0_i32_0 = arith.constant 0 : i32
    return %arg1, %c0_i32 : i32, i32
  }
}

</mosaic_0001>

<bundles_post_ra>
// kernel: tpu_custom_call.1
= control target key start
LH: loop header
LB: loop body
LE: loop exit
PB: predicated region body
PF: predicated region fallthrough
CT: control target
= control target key end

     0   :  { %s1560_s0 = inlined_call_operand.hbm [shape: f32[3], index: 0, kind: input, shape index: {}]   ;;  %s1561_s1 = inlined_call_operand.hbm [shape: bf16[128,128], index: 1, kind: input, shape index: {}]   ;;  %s1562_s2 = inlined_call_operand.hbm [shape: f32[128,128], index: 2, kind: input, shape index: {}]   ;;  %s1563_s3 = inlined_call_operand.hbm [shape: f32[3,128,128], index: 3, kind: input, shape index: {}]   ;;  %s1564_s4 = inlined_call_operand.vmem [shape: f32[3,1,128], index: 4, kind: input, shape index: {}]   ;;  %s1565_s5 = inlined_call_operand.hbm [shape: f32[128,128], index: 5, kind: output, shape index: {}]  }
   0x1   :  { %1567 = sst [smem:[#allocation17_spill]] %s1560_s0 }
   0x2   :  { %10 = vsyncpa [#allocation6], 0 }
   0x3   :  { %11 = vsyncpa [#allocation4], 0 }
   0x4   :  { %12 = vsyncpa [#allocation9], 0 }
   0x5   :  { %13 = vsyncpa [#allocation5], 0  ;;  %s1249_s18 = smov 0   ;;  %s1251_s19 = smov 0  }
   0x6   :  { %s1253_s20 = smov 0   ;;  %s1255_s21 = smov 0  }
   0x7   :  { %s1257_s22 = smov 0   ;;  %s1259_s23 = smov 0  }
   0x8 LB: > { %s1278_s24 = sadd.s32 4294967295, %s1207_s23   ;;  %p119_p0 = scmp.ne.s32.totalorder %s1191_s19, %s1187_s18  ;;  %s1207_s23 = sphi %s1259_s23, %s19_s23   ;;  %s1203_s22 = sphi %s1257_s22, %s1578_s22   ;;  %s1199_s21 = sphi %s1255_s21, %s1577_s21   ;;  %s1195_s20 = sphi %s1253_s20, %s1576_s20   ;;  %s1191_s19 = sphi %s1251_s19, %s1575_s19   ;;  %s1187_s18 = sphi %s1249_s18, %s1574_s18  }
   0x9   : > { %p120_p1 = scmp.eq.s32.totalorder %s1278_s24, 0  ;;  %p807_p2 = scmp.ge.s32.totalorder %s1207_s23, 1 }
   0xa   : > { %p182_p3 = scmp.lt.s32.totalorder %s1207_s23, 4  ;;  %s206_s28 = sshll.u32 %s1561_s1, 4  ;;  %s207_s28 = int_to_ptr.hbm [resolvable:$true] %s206_s28 }
   0xb   : > { %p1286_p4 = por %p120_p1, %p119_p0  ;;  %s1209_s30 = smov [#allocation7]  }
   0xc   : > { %p1293_p5 = pnand %p807_p2, %p182_p3  ;;  %s208_s6 = sshll.u32 %s1209_s30, 4  ;;  %s209_s6 = int_to_ptr.vmem [resolvable:$true] %s208_s6 }
   0xd   : > { %s1571_s0 = sld [smem:[#allocation17_spill]]  ;;  %s1210_s11 = smov 64  }
   0xe   : > { %p926_p6 = pneg %p1293_p5  ;;  %s1211_s12 = smov 4  }
   0xf   : > { %s1212_s13 = smov [#allocation3]   ;;  %s220_s16 = sshll.u32 %s1562_s2, 4  ;;  %s221_s16 = int_to_ptr.hbm [resolvable:$true] %s220_s16 }
  0x10   : > { %p1301_p7 = pnand %p926_p6, %p120_p1  ;;  %s1213_s17 = smov [#allocation8]  }
  0x11   : > { %s222_s18 = sshll.u32 %s1213_s17, 4  ;;  %s1566_s26 = smov 128   ;;  %s223_s18 = int_to_ptr.vmem [resolvable:$true] %s222_s18 }
  0x12   : > { %932 = dma.hbm_to_vmem [thread:$0]  (!%p1301_p7), %s207_s28, 1024, %s209_s6, [#allocation4], %s1210_s11, %s1210_s11, %s1211_s12  }
  0x13   : > { %s194_s10 = sshll.u32 %s1571_s0, 4  ;;  %s1215_s27 = smov 8   ;;  %s195_s10 = int_to_ptr.hbm [resolvable:$true] %s194_s10 }
  0x14   : > { %929 = dma.hbm_to_smem (!%p1301_p7), %s195_s10, 16, %s1212_s13, [#allocation6]  }
  0x15   : > { %935 = dma.hbm_to_vmem [thread:$0]  (!%p1301_p7), %s221_s16, 2048, %s223_s18, [#allocation9], %s1566_s26, %s1566_s26, %s1215_s27  }
  0x16   : > { %s106_s28 = sadd.s32 1, %s1195_s20  ;;  %s31_s30 = sadd.s32 1, %s1203_s22 }
  0x17   : > { %p113_p8 = scmp.ne.s32.totalorder %s1195_s20, %s1191_s19  ;;  %p33_p9 = scmp.ge.s32.totalorder %s31_s30, 3 }
  0x18   : > { %p114_p10 = scmp.eq.s32.totalorder %s1207_s23, 0  ;;  %p943_p11 = scmp.lt.s32.totalorder %s1207_s23, 3 }
  0x19   : > { %s236_s6 = sand.u32 1, %s1207_s23   ;;  %s1580_s30 = smov (%p33_p9, %s31_s30), 0 }
  0x1a   : > { %p1329_p12 = por %p114_p10, %p113_p8  ;;  %s103_s7 = ssub.s32 %s1203_s22, %s1580_s30 }
  0x1b   : > { %s238_s9 = sand.u32 1, %s1195_s20   ;;  %p104_p13 = scmp.eq.s32.totalorder %s103_s7, 0 }
  0x1c   : > { %s812_s10 = sshll.u32 %s238_s9, 7  ;;  %s835_s11 = sshll.u32 %s1203_s22, 7 }
  0x1d   : > { %s1338_s12 = scalar_select %p104_p13, %s1195_s20, %s106_s28  }
  0x1e   : > { %s245_s15 = scalar_lea.hbm %s1563_s3, %s835_s11  ;;  %s240_s16 = scalar_lea.vmem [#allocation10], %s812_s10 }
  0x1f   : > { %s248_s17 = sshll.u32 %s240_s16, 4  ;;  %s246_s18 = sshll.u32 %s245_s15, 4  ;;  %s249_s17 = int_to_ptr.vmem [resolvable:$true] %s248_s17  ;;  %s247_s18 = int_to_ptr.hbm [resolvable:$true] %s246_s18 }
  0x20   : > { %p937_p0 = pnand %p943_p11, %p1329_p12  ;;  %s237_s26 = scalar_lea.sflag [#allocation4], %s236_s6 }
  0x21   : > { %s1573_s0 = smov 128   ;;  %266 = sbr.rel (%p1293_p5) target bundleno = 479 (0x1df), region = 40 }
  0x22   : > { %939 = dma.hbm_to_vmem [thread:$0]  (!%p937_p0), %s247_s18, 2048, %s249_s17, %s237_s26, %s1573_s0, %s1573_s0, %s1215_s27  }
  0x26   : > { %1166 = dma.done.wait (%p120_p1), [#allocation6], 16  }
  0x27   : > { %1168 = vsyncadd (%p120_p1), [#allocation6], 4294967280 }
  0x28   : > { %1170 = dma.done.wait (%p120_p1), [#allocation4], 1024  }
  0x29   : > { %1172 = vsyncadd (%p120_p1), [#allocation4], 4294966272 }
  0x2a   : > { %1174 = dma.done.wait (%p120_p1), [#allocation9], 2048  }
  0x2b   : > { %1176 = vsyncadd (%p120_p1), [#allocation9], 4294965248  ;;  %s283_s0 = sand.u32 1, %s1278_s24   ;;  %s285_s29 = sand.u32 1, %s1191_s19  }
  0x2c   : > { %s819_s26 = sshll.u32 %s285_s29, 7  ;;  %s284_s27 = scalar_lea.sflag [#allocation4], %s283_s0 }
  0x2d   : > { %s1366_s28 = scalar_lea.vmem [#allocation10], %s819_s26 }
  0x2e   : > { %1178 = dma.done.wait (%p1286_p4), %s284_s27, 2048  }
  0x2f   : > { %1180 = vsyncadd (%p1286_p4), %s284_s27, 4294965248 }
  0x30   : > { %293 = sfence }
  0x31   : > { %p315_p2 = scmp.lt.s32.totalorder %s1199_s21, 2  ;;  %p319_p1 = scmp.eq.s32.totalorder %s1199_s21, 0 }
  0x32   : > { %v325_v0 = vld [vmem:[#allocation8] sm:$0xff] (%p319_p1)  ;;  %v326_v1 = vld [vmem:[#allocation8 + $0x8] sm:$0xff] (%p319_p1)  ;;  %v327_v2 = vld [vmem:[#allocation8 + $0x10] sm:$0xff] (%p319_p1) }
  0x33   : > { %s1375_s6 = scalar_select %p315_p2, %s1199_s21, 2  ;;  %341 = vst [vmem:[#allocation2] sm:$0xff] (%p319_p1), %v325_v0  ;;  %v328_v3 = vld [vmem:[#allocation8 + $0x18] sm:$0xff] (%p319_p1)  ;;  %v329_v4 = vld [vmem:[#allocation8 + $0x20] sm:$0xff] (%p319_p1)  ;;  %v330_v5 = vld [vmem:[#allocation8 + $0x28] sm:$0xff] (%p319_p1) }
  0x34   : > { %324 = sbr.rel (!%p319_p1) target bundleno = 67 (0x43), region = 60  ;;  %342 = vst [vmem:[#allocation2 + $0x8] sm:$0xff] (%p319_p1), %v326_v1  ;;  %v331_v6 = vld [vmem:[#allocation8 + $0x30] sm:$0xff] (%p319_p1)  ;;  %v332_v7 = vld [vmem:[#allocation8 + $0x38] sm:$0xff] (%p319_p1)  ;;  %v333_v8 = vld [vmem:[#allocation8 + $0x40] sm:$0xff] (%p319_p1) }
  0x35   : > { %s317_s9 = scalar_lea.vmem %s1564_s4, %s1375_s6  ;;  %343 = vst [vmem:[#allocation2 + $0x10] sm:$0xff] (%p319_p1), %v327_v2  ;;  %v334_v9 = vld [vmem:[#allocation8 + $0x48] sm:$0xff] (%p319_p1)  ;;  %v335_v10 = vld [vmem:[#allocation8 + $0x50] sm:$0xff] (%p319_p1)  ;;  %v336_v11 = vld [vmem:[#allocation8 + $0x58] sm:$0xff] (%p319_p1) }
  0x36   : > { %344 = vst [vmem:[#allocation2 + $0x18] sm:$0xff] (%p319_p1), %v328_v3  ;;  %v337_v12 = vld [vmem:[#allocation8 + $0x60] sm:$0xff] (%p319_p1)  ;;  %v338_v13 = vld [vmem:[#allocation8 + $0x68] sm:$0xff] (%p319_p1)  ;;  %v339_v14 = vld [vmem:[#allocation8 + $0x70] sm:$0xff] (%p319_p1) }
  0x37   : > { %345 = vst [vmem:[#allocation2 + $0x20] sm:$0xff] (%p319_p1), %v329_v4  ;;  %v340_v15 = vld [vmem:[#allocation8 + $0x78] sm:$0xff] (%p319_p1) }
  0x38   : > { %346 = vst [vmem:[#allocation2 + $0x28] sm:$0xff] (%p319_p1), %v330_v5 }
  0x39   : > { %347 = vst [vmem:[#allocation2 + $0x30] sm:$0xff] %v331_v6 }
  0x3a   : > { %348 = vst [vmem:[#allocation2 + $0x38] sm:$0xff] %v332_v7 }
  0x3b   : > { %349 = vst [vmem:[#allocation2 + $0x40] sm:$0xff] %v333_v8 }
  0x3c   : > { %350 = vst [vmem:[#allocation2 + $0x48] sm:$0xff] %v334_v9 }
  0x3d   : > { %351 = vst [vmem:[#allocation2 + $0x50] sm:$0xff] %v335_v10 }
  0x3e   : > { %352 = vst [vmem:[#allocation2 + $0x58] sm:$0xff] %v336_v11 }
  0x3f   : > { %353 = vst [vmem:[#allocation2 + $0x60] sm:$0xff] %v337_v12 }
  0x40   : > { %354 = vst [vmem:[#allocation2 + $0x68] sm:$0xff] %v338_v13 }
  0x41   : > { %355 = vst [vmem:[#allocation2 + $0x70] sm:$0xff] %v339_v14 }
  0x42   : > { %356 = vst [vmem:[#allocation2 + $0x78] sm:$0xff] %v340_v15 }
  0x43 PF: > { %p357_p3 = scmp.lt.s32.totalorder %s1199_s21, 0  ;;  %s358_s25 = ssub.s32 0, %s1199_s21  ;;  %v872_v30 = vld [vmem:[#allocation7 + $0x20] sm:$0xff]   ;;  %v873_v38 = vld [vmem:[#allocation7 + $0x28] sm:$0xff]   ;;  %v550_v44 = vld [vmem:[%s1366_s28 + $0x78] sm:$0xff] }
  0x44   : > { %s821_s10 = smin.u32 %s1199_s21, %s358_s25  ;;  %s369_s11 = sadd.s32 1, %s1199_s21  ;;  %v838_v31 = vld [vmem:[#allocation7] sm:$0xff]   ;;  %v855_v34 = vunpack.c.l.bf16 %v872_v30  ;;  %v856_v36 = vunpack.c.h.bf16 %v872_v30  ;;  %v869_v39 = vld [vmem:[#allocation7 + $0x8] sm:$0xff]   ;;  %v859_v40 = vunpack.c.l.bf16 %v873_v38  ;;  %v860_v42 = vunpack.c.h.bf16 %v873_v38  ;;  %v549_v45 = vld [vmem:[%s1366_s28 + $0x70] sm:$0xff]  ;;  %892 = vmatpush.msra.mxu3 %v550_v44  ;;  %555 = vmatpush.msra.mxu1 %v550_v44 }
  0x45   : > { %s360_s13 = sand.u32 1, %s821_s10   ;;  %s371_s15 = ssub.s32 0, %s369_s11  ;;  %v839_v35 = vunpack.c.l.bf16 %v838_v31  ;;  %v840_v37 = vunpack.c.h.bf16 %v838_v31  ;;  %v843_v41 = vunpack.c.l.bf16 %v869_v39  ;;  %v844_v43 = vunpack.c.h.bf16 %v869_v39  ;;  %v874_v46 = vld [vmem:[#allocation7 + $0x30] sm:$0xff]   ;;  %v548_v48 = vld [vmem:[%s1366_s28 + $0x68] sm:$0xff]  ;;  %v547_v51 = vld [vmem:[%s1366_s28 + $0x60] sm:$0xff] }
  0x46   : > { %s361_s14 = ssub.s32 0, %s360_s13  ;;  %s824_s16 = smin.u32 %s371_s15, %s369_s11  ;;  %v870_v47 = vld [vmem:[#allocation7 + $0x10] sm:$0xff]   ;;  %893 = vmatpush.msra.mxu3 %v549_v45  ;;  %556 = vmatpush.msra.mxu1 %v549_v45  ;;  %v863_v49 = vunpack.c.l.bf16 %v874_v46  ;;  %v546_v52 = vld [vmem:[%s1366_s28 + $0x58] sm:$0xff]  ;;  %v544_v54 = vld [vmem:[%s1366_s28 + $0x48] sm:$0xff]  ;;  %v864_v55 = vunpack.c.h.bf16 %v874_v46 }
  0x47   : > { %s1582_s14 = smov (!%p357_p3, %s361_s14), %s360_s13  ;;  %p370_p5 = scmp.lt.s32.totalorder %s369_s11, 0  ;;  %v847_v50 = vunpack.c.l.bf16 %v870_v47  ;;  %v545_v53 = vld [vmem:[%s1366_s28 + $0x50] sm:$0xff]  ;;  %v848_v56 = vunpack.c.h.bf16 %v870_v47  ;;  %v543_v57 = vld [vmem:[%s1366_s28 + $0x40] sm:$0xff]  ;;  %v542_v58 = vld [vmem:[%s1366_s28 + $0x38] sm:$0xff] }
  0x48   : > { %p823_p4 = scmp.lt.s32.totalorder %s1582_s14, 0  ;;  %s367_s17 = sadd.s32 2, %s1582_s14  ;;  %894 = vmatpush.msra.mxu3 %v548_v48  ;;  %557 = vmatpush.msra.mxu1 %v548_v48  ;;  %v541_v59 = vld [vmem:[%s1366_s28 + $0x30] sm:$0xff]  ;;  %v875_v60 = vld [vmem:[#allocation7 + $0x38] sm:$0xff]   ;;  %v540_v62 = vld [vmem:[%s1366_s28 + $0x28] sm:$0xff] }
  0x49   : > { %s373_s18 = sand.u32 1, %s824_s16   ;;  %v871_v61 = vld [vmem:[#allocation7 + $0x18] sm:$0xff]   ;;  %v867_v63 = vunpack.c.l.bf16 %v875_v60  ;;  %v539_v1 = vld [vmem:[%s1366_s28 + $0x20] sm:$0xff]  ;;  %v537_v3 = vld [vmem:[%s1366_s28 + $0x10] sm:$0xff]  ;;  %v868_v4 = vunpack.c.h.bf16 %v875_v60  ;;  %s451_s8 = sld [smem:[#allocation3 + %s1199_s21]] }
  0x4a   : > { %s1584_s17 = smov (!%p823_p4, %s367_s17), %s1582_s14  ;;  %s374_s0 = ssub.s32 0, %s373_s18  ;;  %895 = vmatpush.msra.mxu3 %v547_v51  ;;  %558 = vmatpush.msra.mxu1 %v547_v51  ;;  %v851_v0 = vunpack.c.l.bf16 %v871_v61  ;;  %v538_v2 = vld [vmem:[%s1366_s28 + $0x18] sm:$0xff]  ;;  %v852_v5 = vunpack.c.h.bf16 %v871_v61  ;;  %v536_v6 = vld [vmem:[%s1366_s28 + $0x8] sm:$0xff]  ;;  %v535_v7 = vld [vmem:[%s1366_s28] sm:$0xff] }
  0x4b   : > { %s827_s29 = sshll.u32 %s1584_s17, 7  ;;  %s1586_s0 = smov (!%p370_p5, %s374_s0), %s373_s18  ;;  %v1007_v60 = vld [vmem:[%s317_s9] ss:$0 sm:$0xff] }
  0x4c   : > { %s1385_s26 = scalar_lea.vmem [#allocation2], %s827_s29  ;;  %p826_p6 = scmp.lt.s32.totalorder %s1586_s0, 0  ;;  %896 = vmatpush.msra.mxu3 %v546_v52  ;;  %559 = vmatpush.msra.mxu1 %v546_v52 }
  0x4d   : > { %v1388_v16 = vld [vmem:[%s1385_s26 + $0x78] sm:$0xff]  ;;  %v1391_v17 = vld [vmem:[%s1385_s26 + $0x70] sm:$0xff]  ;;  %v1396_v18 = vld [vmem:[%s1385_s26 + $0x68] sm:$0xff]  ;;  %s380_s27 = sadd.s32 2, %s1586_s0  ;;  %p828_p7 = scmp.ge.s32.totalorder %s1199_s21, 2 }
  0x4e   : > { %876 = vmatpush.msra.mxu2 %v1388_v16  ;;  %470 = vmatpush.msra.mxu0 %v1388_v16  ;;  %v1401_v19 = vld [vmem:[%s1385_s26 + $0x60] sm:$0xff]  ;;  %s1588_s27 = smov (!%p826_p6, %s380_s27), %s1586_s0  ;;  %v1408_v20 = vld [vmem:[%s1385_s26 + $0x58] sm:$0xff]  ;;  %v1413_v21 = vld [vmem:[%s1385_s26 + $0x50] sm:$0xff] }
  0x4f   : > { %v1418_v22 = vld [vmem:[%s1385_s26 + $0x48] sm:$0xff]  ;;  %v1423_v23 = vld [vmem:[%s1385_s26 + $0x40] sm:$0xff]  ;;  %v1428_v24 = vld [vmem:[%s1385_s26 + $0x38] sm:$0xff]  ;;  %897 = vmatpush.msra.mxu3 %v545_v53  ;;  %560 = vmatpush.msra.mxu1 %v545_v53  ;;  %s452_s7 = sadd.f32 1.0, %s451_s8  ;;  %s829_s6 = sshll.u32 (!%p828_p7), %s1588_s27, 7 }
  0x50   : > { %877 = vmatpush.msra.mxu2 %v1391_v17  ;;  %471 = vmatpush.msra.mxu0 %v1391_v17  ;;  %v1433_v25 = vld [vmem:[%s1385_s26 + $0x30] sm:$0xff]  ;;  %v1438_v26 = vld [vmem:[%s1385_s26 + $0x28] sm:$0xff]  ;;  %v1443_v27 = vld [vmem:[%s1385_s26 + $0x20] sm:$0xff]  ;;  %s642_s9 = scalar_lea.vmem (!%p828_p7), [#allocation2], %s829_s6 }
  0x51   : > { %v1448_v28 = vld [vmem:[%s1385_s26 + $0x18] sm:$0xff]  ;;  %v1453_v29 = vld [vmem:[%s1385_s26 + $0x10] sm:$0xff]  ;;  %v1458_v32 = vld [vmem:[%s1385_s26 + $0x8] sm:$0xff]  ;;  %898 = vmatpush.msra.mxu3 %v544_v54  ;;  %561 = vmatpush.msra.mxu1 %v544_v54  ;;  %v453_v8 = vstv %s452_s7 }
  0x52   : > { %878 = vmatpush.msra.mxu2 %v1396_v18  ;;  %472 = vmatpush.msra.mxu0 %v1396_v18  ;;  %v1463_v33 = vld [vmem:[%s1385_s26] sm:$0xff]  ;;  %v462_v12 = vmul.f32 %v453_v8, %v1423_v23  ;;  %v455_v13 = vmul.f32 %v453_v8, %v1458_v32 }
  0x53   : > { %899 = vmatpush.msra.mxu3 %v543_v57  ;;  %562 = vmatpush.msra.mxu1 %v543_v57  ;;  %v454_v9 = vmul.f32 %v453_v8, %v1463_v33 }
  0x54   : > { %879 = vmatpush.msra.mxu2 %v1401_v19  ;;  %473 = vmatpush.msra.mxu0 %v1401_v19 }
  0x55   : > { %900 = vmatpush.msra.mxu3 %v542_v58  ;;  %563 = vmatpush.msra.mxu1 %v542_v58 }
  0x56   : > { %880 = vmatpush.msra.mxu2 %v1408_v20  ;;  %474 = vmatpush.msra.mxu0 %v1408_v20 }
  0x57   : > { %901 = vmatpush.msra.mxu3 %v541_v59  ;;  %564 = vmatpush.msra.mxu1 %v541_v59 }
  0x58   : > { %881 = vmatpush.msra.mxu2 %v1413_v21  ;;  %475 = vmatpush.msra.mxu0 %v1413_v21 }
  0x59   : > { %902 = vmatpush.msra.mxu3 %v540_v62  ;;  %565 = vmatpush.msra.mxu1 %v540_v62 }
  0x5a   : > { %882 = vmatpush.msra.mxu2 %v1418_v22  ;;  %476 = vmatpush.msra.mxu0 %v1418_v22 }
  0x5b   : > { %903 = vmatpush.msra.mxu3 %v539_v1  ;;  %566 = vmatpush.msra.mxu1 %v539_v1 }
  0x5c   : > { %883 = vmatpush.msra.mxu2 %v1423_v23  ;;  %477 = vmatpush.msra.mxu0 %v1423_v23  ;;  %v464_v23 = vmul.f32 %v453_v8, %v1413_v21  ;;  %v466_v21 = vmul.f32 %v453_v8, %v1401_v19  ;;  %v468_v19 = vmul.f32 %v453_v8, %v1391_v17 }
  0x5d   : > { %904 = vmatpush.msra.mxu3 %v538_v2  ;;  %567 = vmatpush.msra.mxu1 %v538_v2 }
  0x5e   : > { %884 = vmatpush.msra.mxu2 %v1428_v24  ;;  %478 = vmatpush.msra.mxu0 %v1428_v24 }
  0x5f   : > { %905 = vmatpush.msra.mxu3 %v537_v3  ;;  %568 = vmatpush.msra.mxu1 %v537_v3 }
  0x60   : > { %885 = vmatpush.msra.mxu2 %v1433_v25  ;;  %479 = vmatpush.msra.mxu0 %v1433_v25 }
  0x61   : > { %906 = vmatpush.msra.mxu3 %v536_v6  ;;  %569 = vmatpush.msra.mxu1 %v536_v6 }
  0x62   : > { %886 = vmatpush.msra.mxu2 %v1438_v26  ;;  %480 = vmatpush.msra.mxu0 %v1438_v26 }
  0x63   : > { %907 = vmatpush.msra.mxu3 %v535_v7  ;;  %570 = vmatpush.msra.mxu1 %v535_v7 }
  0x64   : > { %887 = vmatpush.msra.mxu2 %v1443_v27  ;;  %481 = vmatpush.msra.mxu0 %v1443_v27 }
  0x66   : > { %888 = vmatpush.msra.mxu2 %v1448_v28  ;;  %482 = vmatpush.msra.mxu0 %v1448_v28 }
  0x68   : > { %889 = vmatpush.msra.mxu2 %v1453_v29  ;;  %483 = vmatpush.msra.mxu0 %v1453_v29 }
  0x6a   : > { %890 = vmatpush.msra.mxu2 %v1458_v32  ;;  %484 = vmatpush.msra.mxu0 %v1458_v32  ;;  %v457_v32 = vmul.f32 %v453_v8, %v1448_v28  ;;  %v459_v28 = vmul.f32 %v453_v8, %v1438_v26  ;;  %v461_v26 = vmul.f32 %v453_v8, %v1428_v24 }
  0x6c   : > { %891 = vmatpush.msra.mxu2 %v1463_v33  ;;  %485 = vmatpush.msra.mxu0 %v1463_v33 }
  0x6d   : > { %510 = vmatmul.f32.vlgmr.msra.gmra.mxu2 %v855_v34  ;;  %486 = vmatmul.f32.vlgmr.msra.gmra.mxu0 %v839_v35  ;;  %v463_v34 = vmul.f32 %v453_v8, %v1418_v22  ;;  %v456_v35 = vmul.f32 %v453_v8, %v1453_v29  ;;  %v465_v22 = vmul.f32 %v453_v8, %v1408_v20 }
  0x6e   : > { %v458_v29 = vmul.f32 %v453_v8, %v1443_v27  ;;  %v467_v20 = vmul.f32 %v453_v8, %v1396_v18  ;;  %v460_v27 = vmul.f32 %v453_v8, %v1433_v25  ;;  %v469_v18 = vmul.f32 %v453_v8, %v1388_v16 }
  0x75   : > { %513 = vmatmul.f32.gmra.mxu2 %v856_v36  ;;  %489 = vmatmul.f32.gmra.mxu0 %v840_v37 }
  0x7d   : > { %516 = vmatmul.f32.gmra.mxu2 %v859_v40  ;;  %492 = vmatmul.f32.gmra.mxu0 %v843_v41 }
  0x85   : > { %519 = vmatmul.f32.gmra.mxu2 %v860_v42  ;;  %495 = vmatmul.f32.gmra.mxu0 %v844_v43 }
  0x8d   : > { %522 = vmatmul.f32.gmra.mxu2 %v863_v49  ;;  %498 = vmatmul.f32.gmra.mxu0 %v847_v50 }
  0x95   : > { %525 = vmatmul.f32.gmra.mxu2 %v864_v55  ;;  %501 = vmatmul.f32.gmra.mxu0 %v848_v56 }
  0x9d   : > { %528 = vmatmul.f32.gmra.mxu2 %v867_v63  ;;  %504 = vmatmul.f32.gmra.mxu0 %v851_v0 }
  0xa5   : > { %531 = vmatmul.f32.gmra.mxu2 %v868_v4  ;;  %507 = vmatmul.f32.gmra.mxu0 %v852_v5 }
  0xea   : > { %v487_v10 = vpop.f32.mrf.mxu0 }
  0xeb   : > { %v488_v11 = vadd.f32 %v487_v10, %v454_v9 }
  0xed   : > { %571 = vmatmul.f32.vlgmr.msra.gmra.mxu1 %v488_v11 }
  0xf0   : > { %v511_v14 = vpop.f32.mrf.mxu2 }
  0xf1   : > { %v512_v15 = vadd.f32 %v511_v14, %v462_v12 }
  0xf2   : > { %v490_v30 = vpop.f32.mrf.mxu0 }
  0xf3   : > { %595 = vmatmul.f32.vlgmr.msra.gmra.mxu3 %v512_v15  ;;  %v491_v31 = vadd.f32 %v490_v30, %v455_v13 }
  0xf5   : > { %574 = vmatmul.f32.gmra.mxu1 %v491_v31 }
  0xf8   : > { %v514_v36 = vpop.f32.mrf.mxu2 }
  0xf9   : > { %v515_v37 = vadd.f32 %v514_v36, %v463_v34 }
  0xfa   : > { %v493_v33 = vpop.f32.mrf.mxu0 }
  0xfb   : > { %598 = vmatmul.f32.gmra.mxu3 %v515_v37  ;;  %v494_v38 = vadd.f32 %v493_v33, %v456_v35 }
  0xfd   : > { %577 = vmatmul.f32.gmra.mxu1 %v494_v38 }
 0x100   : > { %v517_v39 = vpop.f32.mrf.mxu2 }
 0x101   : > { %v518_v40 = vadd.f32 %v517_v39, %v464_v23 }
 0x102   : > { %v496_v41 = vpop.f32.mrf.mxu0 }
 0x103   : > { %601 = vmatmul.f32.gmra.mxu3 %v518_v40  ;;  %v497_v42 = vadd.f32 %v496_v41, %v457_v32 }
 0x105   : > { %580 = vmatmul.f32.gmra.mxu1 %v497_v42 }
 0x108   : > { %v520_v43 = vpop.f32.mrf.mxu2 }
 0x109   : > { %v521_v44 = vadd.f32 %v520_v43, %v465_v22 }
 0x10a   : > { %v499_v45 = vpop.f32.mrf.mxu0 }
 0x10b   : > { %604 = vmatmul.f32.gmra.mxu3 %v521_v44  ;;  %v500_v46 = vadd.f32 %v499_v45, %v458_v29 }
 0x10d   : > { %583 = vmatmul.f32.gmra.mxu1 %v500_v46 }
 0x110   : > { %v523_v47 = vpop.f32.mrf.mxu2 }
 0x111   : > { %v524_v48 = vadd.f32 %v523_v47, %v466_v21 }
 0x112   : > { %v502_v49 = vpop.f32.mrf.mxu0 }
 0x113   : > { %607 = vmatmul.f32.gmra.mxu3 %v524_v48  ;;  %v503_v50 = vadd.f32 %v502_v49, %v459_v28 }
 0x115   : > { %586 = vmatmul.f32.gmra.mxu1 %v503_v50 }
 0x118   : > { %v526_v51 = vpop.f32.mrf.mxu2 }
 0x119   : > { %v527_v52 = vadd.f32 %v526_v51, %v467_v20 }
 0x11a   : > { %v505_v53 = vpop.f32.mrf.mxu0 }
 0x11b   : > { %610 = vmatmul.f32.gmra.mxu3 %v527_v52  ;;  %v506_v54 = vadd.f32 %v505_v53, %v460_v27 }
 0x11d   : > { %589 = vmatmul.f32.gmra.mxu1 %v506_v54 }
 0x120   : > { %v529_v55 = vpop.f32.mrf.mxu2 }
 0x121   : > { %v530_v56 = vadd.f32 %v529_v55, %v468_v19 }
 0x122   : > { %v508_v57 = vpop.f32.mrf.mxu0 }
 0x123   : > { %613 = vmatmul.f32.gmra.mxu3 %v530_v56  ;;  %v509_v58 = vadd.f32 %v508_v57, %v461_v26 }
 0x125   : > { %592 = vmatmul.f32.gmra.mxu1 %v509_v58 }
 0x128   : > { %v532_v25 = vpop.f32.mrf.mxu2 }
 0x129   : > { %v533_v59 = vadd.f32 %v532_v25, %v469_v18 }
 0x12b   : > { %616 = vmatmul.f32.gmra.mxu3 %v533_v59 }
 0x16a   : > { %v572_v17 = vpop.f32.mrf.mxu1 }
 0x16b   : > { %v1507_v61 = vadd.f32 %v1007_v60, %v572_v17 }
 0x172   : > { %v575_v24 = vpop.f32.mrf.mxu1 }
 0x173   : > { %v1509_v62 = vadd.f32 %v1007_v60, %v575_v24 }
 0x176   : > { %v596_v63 = vpop.f32.mrf.mxu3 }
 0x177   : > { %v1511_v0 = vadd.f32 %v1007_v60, %v596_v63 }
 0x17a   : > { %v578_v1 = vpop.f32.mrf.mxu1 }
 0x17b   : > { %v1513_v16 = vadd.f32 %v1007_v60, %v578_v1 }
 0x17e   : > { %v599_v2 = vpop.f32.mrf.mxu3 }
 0x17f   : > { %v1515_v3 = vadd.f32 %v1007_v60, %v599_v2 }
 0x182   : > { %v581_v4 = vpop.f32.mrf.mxu1 }
 0x183   : > { %v582_v5 = vadd.f32 %v1007_v60, %v581_v4 }
 0x186   : > { %v602_v6 = vpop.f32.mrf.mxu3 }
 0x187   : > { %v1517_v7 = vadd.f32 %v1007_v60, %v602_v6 }
 0x18a   : > { %v584_v8 = vpop.f32.mrf.mxu1 }
 0x18b   : > { %v585_v9 = vadd.f32 %v1007_v60, %v584_v8 }
 0x18e   : > { %v605_v10 = vpop.f32.mrf.mxu3 }
 0x18f   : > { %v1519_v11 = vadd.f32 %v1007_v60, %v605_v10 }
 0x192   : > { %v587_v12 = vpop.f32.mrf.mxu1 }
 0x193   : > { %v588_v13 = vadd.f32 %v1007_v60, %v587_v12 }
 0x196   : > { %v608_v14 = vpop.f32.mrf.mxu3 }
 0x197   : > { %v609_v15 = vadd.f32 %v1007_v60, %v608_v14 }
 0x19a   : > { %v590_v30 = vpop.f32.mrf.mxu1 }
 0x19b   : > { %v591_v31 = vadd.f32 %v1007_v60, %v590_v30 }
 0x19e   : > { %v611_v34 = vpop.f32.mrf.mxu3 }
 0x19f   : > { %v612_v35 = vadd.f32 %v1007_v60, %v611_v34 }
 0x1a2   : > { %v593_v36 = vpop.f32.mrf.mxu1 }
 0x1a3   : > { %v594_v37 = vadd.f32 %v1007_v60, %v593_v36 }
 0x1a6   : > { %v614_v33 = vpop.f32.mrf.mxu3 }
 0x1a7   : > { %v615_v38 = vadd.f32 %v1007_v60, %v614_v33 }
 0x1ab   : > { %623 = sbr.rel (%p828_p7) target bundleno = 450 (0x1c2), region = 64 }
 0x1ae   : > { %v617_v23 = vpop.f32.mrf.mxu3 }
 0x1af   : > { %v618_v32 = vadd.f32 %v1007_v60, %v617_v23 }
 0x1b0   : > { %v624_v39 = vmax.f32 %v1507_v61, 0.0  ;;  %v625_v40 = vmax.f32 %v1509_v62, 0.0  ;;  %v626_v41 = vmax.f32 %v1513_v16, 0.0  ;;  %v627_v42 = vmax.f32 %v582_v5, 0.0 }
 0x1b1   : > { %v628_v22 = vmax.f32 %v585_v9, 0.0  ;;  %v629_v29 = vmax.f32 %v588_v13, 0.0  ;;  %v630_v43 = vmax.f32 %v591_v31, 0.0  ;;  %v631_v44 = vmax.f32 %v594_v37, 0.0 }
 0x1b2   : > { %643 = vst [vmem:[%s642_s9] sm:$0xff] %v624_v39  ;;  %v632_v45 = vmax.f32 %v1511_v0, 0.0  ;;  %v633_v46 = vmax.f32 %v1515_v3, 0.0  ;;  %v634_v21 = vmax.f32 %v1517_v7, 0.0  ;;  %v635_v28 = vmax.f32 %v1519_v11, 0.0 }
 0x1b3   : > { %644 = vst [vmem:[%s642_s9 + $0x8] sm:$0xff] %v625_v40  ;;  %v636_v47 = vmax.f32 %v609_v15, 0.0  ;;  %v637_v48 = vmax.f32 %v612_v35, 0.0  ;;  %v638_v49 = vmax.f32 %v615_v38, 0.0  ;;  %v639_v50 = vmax.f32 %v618_v32, 0.0 }
 0x1b4   : > { %645 = vst [vmem:[%s642_s9 + $0x10] sm:$0xff] %v626_v41 }
 0x1b5   : > { %646 = vst [vmem:[%s642_s9 + $0x18] sm:$0xff] %v627_v42 }
 0x1b6   : > { %647 = vst [vmem:[%s642_s9 + $0x20] sm:$0xff] %v628_v22 }
 0x1b7   : > { %648 = vst [vmem:[%s642_s9 + $0x28] sm:$0xff] %v629_v29 }
 0x1b8   : > { %649 = vst [vmem:[%s642_s9 + $0x30] sm:$0xff] %v630_v43 }
 0x1b9   : > { %650 = vst [vmem:[%s642_s9 + $0x38] sm:$0xff] %v631_v44 }
 0x1ba   : > { %651 = vst [vmem:[%s642_s9 + $0x40] sm:$0xff] %v632_v45 }
 0x1bb   : > { %652 = vst [vmem:[%s642_s9 + $0x48] sm:$0xff] %v633_v46 }
 0x1bc   : > { %653 = vst [vmem:[%s642_s9 + $0x50] sm:$0xff] %v634_v21 }
 0x1bd   : > { %654 = vst [vmem:[%s642_s9 + $0x58] sm:$0xff] %v635_v28 }
 0x1be   : > { %655 = vst [vmem:[%s642_s9 + $0x60] sm:$0xff] %v636_v47 }
 0x1bf   : > { %656 = vst [vmem:[%s642_s9 + $0x68] sm:$0xff] %v637_v48 }
 0x1c0   : > { %657 = vst [vmem:[%s642_s9 + $0x70] sm:$0xff] %v638_v49 }
 0x1c1   : > { %658 = vst [vmem:[%s642_s9 + $0x78] sm:$0xff] %v639_v50 }
 0x1c2 PF: > { %p830_p8 = scmp.ne.s32.totalorder %s1199_s21, 2 }
 0x1c4   : > { %662 = sbr.rel (%p830_p8) target bundleno = 473 (0x1d9), region = 68 }
 0x1c9   : > { %663 = vst [vmem:[#allocation11] sm:$0xff] %v1507_v61 }
 0x1ca   : > { %664 = vst [vmem:[#allocation11 + $0x8] sm:$0xff] %v1509_v62 }
 0x1cb   : > { %665 = vst [vmem:[#allocation11 + $0x10] sm:$0xff] %v1513_v16 }
 0x1cc   : > { %666 = vst [vmem:[#allocation11 + $0x18] sm:$0xff] %v582_v5 }
 0x1cd   : > { %667 = vst [vmem:[#allocation11 + $0x20] sm:$0xff] %v585_v9 }
 0x1ce   : > { %668 = vst [vmem:[#allocation11 + $0x28] sm:$0xff] %v588_v13 }
 0x1cf   : > { %669 = vst [vmem:[#allocation11 + $0x30] sm:$0xff] %v591_v31 }
 0x1d0   : > { %670 = vst [vmem:[#allocation11 + $0x38] sm:$0xff] %v594_v37 }
 0x1d1   : > { %671 = vst [vmem:[#allocation11 + $0x40] sm:$0xff] %v1511_v0 }
 0x1d2   : > { %672 = vst [vmem:[#allocation11 + $0x48] sm:$0xff] %v1515_v3 }
 0x1d3   : > { %673 = vst [vmem:[#allocation11 + $0x50] sm:$0xff] %v1517_v7 }
 0x1d4   : > { %674 = vst [vmem:[#allocation11 + $0x58] sm:$0xff] %v1519_v11 }
 0x1d5   : > { %675 = vst [vmem:[#allocation11 + $0x60] sm:$0xff] %v609_v15 }
 0x1d6   : > { %676 = vst [vmem:[#allocation11 + $0x68] sm:$0xff] %v612_v35 }
 0x1d7   : > { %677 = vst [vmem:[#allocation11 + $0x70] sm:$0xff] %v615_v38 }
 0x1d8   : > { %678 = vst [vmem:[#allocation11 + $0x78] sm:$0xff] %v618_v32 }
 0x1d9 PF: > { %p947_p9 = scmp.eq.s32.totalorder %s1278_s24, 2  ;;  %s689_s11 = sshll.u32 %s1565_s5, 4  ;;  %s690_s11 = int_to_ptr.hbm [resolvable:$true] %s689_s11 }
 0x1da   : > { %s1216_s13 = smov [#allocation11]   ;;  %s1217_s15 = smov 128  }
 0x1db   : > { %s687_s14 = sshll.u32 %s1216_s13, 4  ;;  %s1218_s16 = smov 8   ;;  %s688_s14 = int_to_ptr.vmem [resolvable:$true] %s687_s14 }
 0x1dc   : > { %923 = dma.vmem_to_hbm [thread:$0]  (%p947_p9), %s688_s14, 2048, %s690_s11, [#allocation5], %s1217_s15, %s1217_s15, %s1218_s16  }
 0x1dd   : > { %1182 = dma.done.wait (%p947_p9), [#allocation5], 2048  }
 0x1de   : > { %1184 = vsyncadd (%p947_p9), [#allocation5], 4294965248 }
 0x1df PF: > { %s19_s23 = sadd.s32 1, %s1207_s23   ;;  %s1574_s18 = smov %s1191_s19 }
 0x1e0   : > { %p16_p10 = scmp.ge.s32.totalorder %s19_s23, 5   ;;  %s1575_s19 = smov %s1195_s20 }
 0x1e1   : > { %s1576_s20 = smov %s1338_s12  ;;  %s1577_s21 = smov %s1203_s22 }
 0x1e2   : > { %s1578_s22 = smov %s1580_s30  ;;  %18 = sbr.rel (!%p16_p10) target bundleno = 8 (0x8), region = 109 }
 0x1e7   :  { %706 = vsyncpa [#allocation4], 1 }
 0x1e8   :  { %708 = vsyncpa [#allocation4 + $0x1], 1 }
 0x1e9   :  { %709 = vsyncpa [#allocation9], 1 }
 0x1ea   :  { %710 = vsyncpa [#allocation5], 1 }
 0x1eb   :  { %712 = vsyncpa [#allocation5 + $0x1], 1 }
 0x1ec   :  { %713 = vsyncpa [#allocation6], 1 }
 0x1ed   :  { %715 = vsyncpa [#allocation6 + $0x1], 1 }

</bundles_post_ra>
